<compile_context>
chip_gen: v6e
topology: v6e:2x2x1
jax: 0.10.0
libtpu: 0.0.40
codegen_flags: <defaults>
</compile_context>

<pallas_src>
import jax
import jax.numpy as jnp
from jax.experimental import pallas as pl
from jax.experimental.pallas import tpu as pltpu


def _conv1x1_sigmoid_kernel(x_ref, wt_ref, b_ref, o_ref):
    """Fused 1x1-conv + bias + sigmoid on one (batch, spatial-tile) block.

    x_ref : (1, C_in, T)   channels on sublanes, spatial on lanes
    wt_ref: (C_out, C_in)  transposed conv weight (tiny, resident)
    b_ref : (C_out, 1)     bias, lane-broadcast in-kernel
    o_ref : (1, C_out, T)  lane-dense output tile
    """
    c_in = x_ref.shape[1]
    c_out = o_ref.shape[1]

    wt = wt_ref[...].astype(jnp.float32)          # (C_out, C_in), hoisted once
    b = b_ref[...].astype(jnp.float32)            # (C_out, 1)
    x = x_ref[0].astype(jnp.float32)              # (C_in, T)

    if c_in >= 32 and c_out >= 64:
        # Size guard: large heads go to the MXU ((C_out,C_in) @ (C_in,T)).
        y = jnp.dot(wt, x, preferred_element_type=jnp.float32) + b
    else:
        # Tiny contraction (e.g. 4x8): unrolled VPU outer-product accumulate;
        # skipping the MXU avoids near-empty systolic tiles.
        acc = wt[:, 0:1] * x[0:1, :]              # (C_out,1)*(1,T) -> (C_out,T)
        for c in range(1, c_in):
            acc = acc + wt[:, c:c + 1] * x[c:c + 1, :]
        y = acc + b

    # Exact sigmoid with a single EUP transcendental: sigmoid(y) = 0.5*tanh(0.5*y)+0.5
    o_ref[0] = (0.5 * jnp.tanh(0.5 * y) + 0.5).astype(o_ref.dtype)


def _round_up(x, m):
    return (x + m - 1) // m * m


def modified_model_forward(x_nchw, weight, bias, *, max_tile_cols=65536,
                           out_dtype=jnp.float32, min_grid_steps=4):
    """ModifiedModel.forward == sigmoid(conv1x1(x)).

    x_nchw: (N, C_in, H, W) float32
    weight: (C_in, C_out) float32
    bias  : (C_out,) float32
    out_dtype: set to jnp.bfloat16 if the consumer tolerates it (cuts ~1/2 of
               the output HBM writeback on this bandwidth-bound op).
    returns (N, C_out, H, W) out_dtype
    """
    N, C_in, H, W = x_nchw.shape
    C_out = weight.shape[1]
    HW = H * W

    # Channels-on-sublanes / spatial-on-lanes: pure reshape, no HBM transpose.
    x3 = x_nchw.reshape(N, C_in, HW)

    # Pad only to the next multiple of 128 (lane alignment); skip entirely when
    # HW is already aligned -- no extra HBM pass in that (common) case.
    HW_pad = _round_up(HW, 128)
    padded = HW_pad != HW
    if padded:
        x3 = jnp.pad(x3, ((0, 0), (0, 0), (0, HW_pad - HW)))

    # Spatial tile: lane-dense (multiple of 128), large (amortizes ~0.35 us/step
    # pipeline overhead), but split so the total grid has >= min_grid_steps
    # steps -- keeps v7x's 2nd TensorCore busy for small N; no-op on v5e/v6e.
    # Double-buffered working set at the default cap is ~10 MiB: safe against
    # the 32 MiB scoped VMEM on v5e/v6e/v7x (v7x physical VMEM is 64 MiB).
    spatial_splits = max(1, -(-min_grid_steps // N))          # ceil
    tile = _round_up(-(-HW_pad // spatial_splits), 128)       # ceil, 128-aligned
    tile = min(tile, max_tile_cols, HW_pad)
    grid = (N, pl.cdiv(HW_pad, tile))   # last spatial block may be ragged; Pallas clips it

    wt = weight.T                  # (C_out, C_in), negligible
    b2d = bias.reshape(C_out, 1)   # lane-broadcast inside the kernel

    out3 = pl.pallas_call(
        _conv1x1_sigmoid_kernel,
        out_shape=jax.ShapeDtypeStruct((N, C_out, HW_pad), out_dtype),
        grid_spec=pltpu.PrefetchScalarGridSpec(
            num_scalar_prefetch=0,
            grid=grid,
            in_specs=[
                pl.BlockSpec((1, C_in, tile), lambda n, s: (n, 0, s)),
                pl.BlockSpec((C_out, C_in), lambda n, s: (0, 0)),
                pl.BlockSpec((C_out, 1), lambda n, s: (0, 0)),
            ],
            out_specs=pl.BlockSpec((1, C_out, tile), lambda n, s: (n, 0, s)),
        ),
        compiler_params=pltpu.CompilerParams(
            # Both grid axes independent -> megacore sharding on v7x,
            # no-op on single-TC v5e/v6e.
            dimension_semantics=("parallel", "parallel"),
            # Above v5e's 16 MiB default, at v6e/v7x's 32 MiB default, under
            # v7x's 64 MiB physical VMEM.
            vmem_limit_bytes=32 * 1024 * 1024,
        ),
    )(x3, wt, b2d)

    # Epilogue slice only when padding actually happened; otherwise the
    # reshape is a free metadata change (no extra HBM pass on the output).
    if padded:
        out3 = out3[:, :, :HW]
    return out3.reshape(N, C_out, H, W)


if __name__ == "__main__":
    # Small shapes consistent with the module: batch=2, channels=4, spatial=16
    N, C_IN, H, W = 2, 4, 16, 16
    C_OUT = 8

    key = jax.random.PRNGKey(0)
    kx, kw, kb = jax.random.split(key, 3)

    x = jax.random.normal(kx, (N, C_IN, H, W), dtype=jnp.float32)
    # Deterministic synthetic 1x1-conv logits head standing in for original_model.
    weight = jax.random.normal(kw, (C_IN, C_OUT), dtype=jnp.float32) * 0.1
    bias = jax.random.normal(kb, (C_OUT,), dtype=jnp.float32) * 0.1

    out = jax.block_until_ready(modified_model_forward(x, weight, bias))

    # Sanity: sigmoid output must lie in [0, 1] and be NCHW shaped.
    assert out.shape == (N, C_OUT, H, W)
    assert bool(jnp.all((out >= 0.0) & (out <= 1.0)))

    # Cross-check against pure-JAX reference (kernel sigmoid is exact now).
    ref = jax.nn.sigmoid(
        jnp.einsum("nchw,co->nohw", x, weight) + bias[None, :, None, None]
    )
    assert bool(jnp.allclose(out, ref, atol=1e-4, rtol=1e-4))

    print("KERNEL_OK")
</pallas_src>

<mosaic_0001>
module attributes {stable_mosaic.version = 11 : i64} {
  func.func @_conv1x1_sigmoid_kernel(%arg0: i32, %arg1: i32, %arg2: memref<1x4x128xf32, #tpu.memory_space<vmem>>, %arg3: memref<8x4xf32, #tpu.memory_space<vmem>>, %arg4: memref<8x1xf32, #tpu.memory_space<vmem>>, %arg5: memref<1x8x128xf32, #tpu.memory_space<vmem>>) attributes {dimension_semantics = [#tpu.dimension_semantics<parallel>, #tpu.dimension_semantics<parallel>], iteration_bounds = array<i64: 2, 2>, scalar_prefetch = 0 : i64, scratch_operands = 0 : i64, tpu.core_type = #tpu.core_type<tc>, window_params = [{transform_indices = @transform_0, window_bounds = array<i64: 1, 4, 128>}, {pipeline_mode = #tpu.pipeline_mode<synchronous>, transform_indices = @transform_1, window_bounds = array<i64: 8, 4>}, {pipeline_mode = #tpu.pipeline_mode<synchronous>, transform_indices = @transform_2, window_bounds = array<i64: 8, 1>}, {transform_indices = @transform_3, window_bounds = array<i64: 1, 8, 128>}]} {
    %c0 = arith.constant 0 : index
    %c0_0 = arith.constant 0 : index
    %0 = vector.load %arg3[%c0, %c0_0] : memref<8x4xf32, #tpu.memory_space<vmem>>, vector<8x4xf32>
    %c0_1 = arith.constant 0 : index
    %c0_2 = arith.constant 0 : index
    %1 = vector.load %arg4[%c0_1, %c0_2] : memref<8x1xf32, #tpu.memory_space<vmem>>, vector<8x1xf32>
    %c0_3 = arith.constant 0 : index
    %c0_4 = arith.constant 0 : index
    %c0_5 = arith.constant 0 : index
    %2 = vector.load %arg2[%c0_3, %c0_4, %c0_5] : memref<1x4x128xf32, #tpu.memory_space<vmem>>, vector<1x4x128xf32>
    %3 = vector.shape_cast %2 : vector<1x4x128xf32> to vector<4x128xf32>
    %4 = vector.extract_strided_slice %0 {offsets = [0, 0], sizes = [8, 1], strides = [1, 1]} : vector<8x4xf32> to vector<8x1xf32>
    %5 = vector.extract_strided_slice %3 {offsets = [0, 0], sizes = [1, 128], strides = [1, 1]} : vector<4x128xf32> to vector<1x128xf32>
    %6 = vector.broadcast %4 : vector<8x1xf32> to vector<8x128xf32>
    %7 = vector.broadcast %5 : vector<1x128xf32> to vector<8x128xf32>
    %8 = arith.mulf %6, %7 : vector<8x128xf32>
    %9 = vector.extract_strided_slice %0 {offsets = [0, 1], sizes = [8, 1], strides = [1, 1]} : vector<8x4xf32> to vector<8x1xf32>
    %10 = vector.extract_strided_slice %3 {offsets = [1, 0], sizes = [1, 128], strides = [1, 1]} : vector<4x128xf32> to vector<1x128xf32>
    %11 = vector.broadcast %9 : vector<8x1xf32> to vector<8x128xf32>
    %12 = vector.broadcast %10 : vector<1x128xf32> to vector<8x128xf32>
    %13 = arith.mulf %11, %12 : vector<8x128xf32>
    %14 = arith.addf %8, %13 : vector<8x128xf32>
    %15 = vector.extract_strided_slice %0 {offsets = [0, 2], sizes = [8, 1], strides = [1, 1]} : vector<8x4xf32> to vector<8x1xf32>
    %16 = vector.extract_strided_slice %3 {offsets = [2, 0], sizes = [1, 128], strides = [1, 1]} : vector<4x128xf32> to vector<1x128xf32>
    %17 = vector.broadcast %15 : vector<8x1xf32> to vector<8x128xf32>
    %18 = vector.broadcast %16 : vector<1x128xf32> to vector<8x128xf32>
    %19 = arith.mulf %17, %18 : vector<8x128xf32>
    %20 = arith.addf %14, %19 : vector<8x128xf32>
    %21 = vector.extract_strided_slice %0 {offsets = [0, 3], sizes = [8, 1], strides = [1, 1]} : vector<8x4xf32> to vector<8x1xf32>
    %22 = vector.extract_strided_slice %3 {offsets = [3, 0], sizes = [1, 128], strides = [1, 1]} : vector<4x128xf32> to vector<1x128xf32>
    %23 = vector.broadcast %21 : vector<8x1xf32> to vector<8x128xf32>
    %24 = vector.broadcast %22 : vector<1x128xf32> to vector<8x128xf32>
    %25 = arith.mulf %23, %24 : vector<8x128xf32>
    %26 = arith.addf %20, %25 : vector<8x128xf32>
    %27 = vector.broadcast %1 : vector<8x1xf32> to vector<8x128xf32>
    %28 = arith.addf %26, %27 : vector<8x128xf32>
    %cst = arith.constant 5.000000e-01 : f32
    %29 = vector.broadcast %cst : f32 to vector<8x128xf32>
    %30 = arith.mulf %29, %28 : vector<8x128xf32>
    %31 = math.tanh %30 : vector<8x128xf32>
    %cst_6 = arith.constant 5.000000e-01 : f32
    %32 = vector.broadcast %cst_6 : f32 to vector<8x128xf32>
    %33 = arith.mulf %32, %31 : vector<8x128xf32>
    %cst_7 = arith.constant 5.000000e-01 : f32
    %34 = vector.broadcast %cst_7 : f32 to vector<8x128xf32>
    %35 = arith.addf %33, %34 : vector<8x128xf32>
    %c0_8 = arith.constant 0 : index
    %c0_9 = arith.constant 0 : index
    %c0_10 = arith.constant 0 : index
    %36 = vector.load %arg5[%c0_8, %c0_9, %c0_10] : memref<1x8x128xf32, #tpu.memory_space<vmem>>, vector<1x8x128xf32>
    %37 = vector.shape_cast %36 : vector<1x8x128xf32> to vector<8x128xf32>
    %38 = vector.shape_cast %35 : vector<8x128xf32> to vector<1x8x128xf32>
    tpu.vector_store %arg5[%c0_8, %c0_9, %c0_10], %38 {strides = array<i32>} : memref<1x8x128xf32, #tpu.memory_space<vmem>>, vector<1x8x128xf32>,
    return
  }
  func.func @transform_0(%arg0: i32, %arg1: i32) -> (i32, i32, i32) {
    %c0_i32 = arith.constant 0 : i32
    %c0_i32_0 = arith.constant 0 : i32
    return %arg0, %c0_i32, %arg1 : i32, i32, i32
  }
  func.func @transform_1(%arg0: i32, %arg1: i32) -> (i32, i32) {
    %c0_i32 = arith.constant 0 : i32
    %c0_i32_0 = arith.constant 0 : i32
    %c0_i32_1 = arith.constant 0 : i32
    return %c0_i32, %c0_i32_0 : i32, i32
  }
  func.func @transform_2(%arg0: i32, %arg1: i32) -> (i32, i32) {
    %c0_i32 = arith.constant 0 : i32
    %c0_i32_0 = arith.constant 0 : i32
    %c0_i32_1 = arith.constant 0 : i32
    return %c0_i32, %c0_i32_0 : i32, i32
  }
  func.func @transform_3(%arg0: i32, %arg1: i32) -> (i32, i32, i32) {
    %c0_i32 = arith.constant 0 : i32
    %c0_i32_0 = arith.constant 0 : i32
    return %arg0, %c0_i32, %arg1 : i32, i32, i32
  }
}

</mosaic_0001>

<bundles_post_ra>
// kernel: tpu_custom_call.1
= control target key start
LH: loop header
LB: loop body
LE: loop exit
PB: predicated region body
PF: predicated region fallthrough
CT: control target
= control target key end

     0   :  { %8 = vsyncpa [#allocation3], 0  ;;  %s687_s0 = inlined_call_operand.vmem [shape: f32[2,4,256], index: 0, kind: input, shape index: {}]   ;;  %s688_s1 = inlined_call_operand.vmem [shape: f32[8,4], index: 1, kind: input, shape index: {}]   ;;  %s689_s2 = inlined_call_operand.vmem [shape: f32[8,1], index: 2, kind: input, shape index: {}]   ;;  %s690_s3 = inlined_call_operand.hbm [shape: f32[2,8,256], index: 3, kind: output, shape index: {}]  }
   0x1   :  { %10 = vsyncpa [#allocation3 + $0x1], 0  ;;  %s557_s12 = smov 0   ;;  %s559_s13 = smov 0  }
   0x2   :  { %s561_s14 = smov 0   ;;  %s563_s15 = smov 0  }
   0x3   :  { %s565_s16 = smov 0   ;;  %s567_s17 = smov 0  }
   0x4   :  { %s569_s18 = smov 0   ;;  %s571_s19 = smov 0  }
   0x5 LB: > { %s342_s20 = sadd.s32 4294967295, %s530_s19   ;;  %s343_s21 = sadd.s32 4294967294, %s530_s19   ;;  %s530_s19 = sphi %s571_s19, %s16_s19   ;;  %s526_s18 = sphi %s569_s18, %s699_s18   ;;  %s522_s17 = sphi %s567_s17, %s698_s17   ;;  %s518_s16 = sphi %s565_s16, %s697_s16   ;;  %s514_s15 = sphi %s563_s15, %s696_s15   ;;  %s510_s14 = sphi %s561_s14, %s695_s14   ;;  %s506_s13 = sphi %s559_s13, %s694_s13   ;;  %s502_s12 = sphi %s557_s12, %s693_s12  }
   0x6   : > { %s25_s22 = sadd.s32 1, %s522_s17  ;;  %s28_s23 = sadd.s32 1, %s526_s18 }
   0x7   : > { %p26_p0 = scmp.ge.s32.totalorder %s25_s22, 2  ;;  %p117_p1 = scmp.ne.s32.totalorder %s510_s14, %s506_s13 }
   0x8   : > { %p118_p2 = scmp.eq.s32.totalorder %s342_s20, 3  ;;  %p123_p5 = scmp.ne.s32.totalorder %s506_s13, %s502_s12 }
   0x9   : > { %s701_s22 = smov (%p26_p0, %s25_s22), 0  ;;  %s703_s23 = smov (!%p26_p0, %s28_s23), %s526_s18 }
   0xa   : > { %s103_s24 = ssub.s32 %s522_s17, %s701_s22  ;;  %p608_p3 = por %p118_p2, %p117_p1 }
   0xb   : > { %p30_p4 = scmp.ge.s32.totalorder %s703_s23, 2  ;;  %p124_p6 = scmp.eq.s32.totalorder %s343_s21, 3 }
   0xc   : > { %p346_p7 = scmp.ge.s32.totalorder %s530_s19, 1  ;;  %p159_p9 = scmp.lt.s32.totalorder %s530_s19, 5 }
   0xd   : > { %s705_s23 = smov (%p30_p4, %s703_s23), 0  ;;  %p617_p8 = por %p124_p6, %p123_p5 }
   0xe   : > { %s102_s27 = ssub.s32 %s526_s18, %s705_s23  ;;  %s107_s28 = sadd.s32 1, %s510_s14 }
   0xf   : > { %s104_s29 = sor.u32 %s103_s24, %s102_s27  ;;  %p160_p10 = pnand %p346_p7, %p159_p9 }
  0x10   : > { %p105_p11 = scmp.eq.s32.totalorder %s104_s29, 0  ;;  %p186_p12 = scmp.lt.s32.totalorder (!%p160_p10), %s518_s16, 1 }
  0x11   : > { %163 = sbr.rel (%p160_p10) target bundleno = 196 (0xc4), region = 32  ;;  %p188_p13 = scmp.lt.s32.totalorder (!%p160_p10), %s514_s15, 1 }
  0x12   : > { %s626_s30 = scalar_select %p105_p11, %s510_s14, %s107_s28  }
  0x13   : > { %s183_s28 = sand.u32 (!%p160_p10), 1, %s506_s13   ;;  %s351_s4 = sshll.u32 (!%p160_p10), %s518_s16, 1 }
  0x14   : > { %s347_s29 = sshll.u32 (!%p160_p10), %s183_s28, 3  ;;  %s260_s5 = sadd.s32 (!%p160_p10), %s514_s15, %s351_s4 }
  0x15   : > { %s352_s6 = sshll.u32 (!%p160_p10), %s260_s5, 7  ;;  %s185_s7 = scalar_lea.vmem (!%p160_p10), [#allocation2], %s347_s29 }
  0x16   : > { %v194_v0 = vld [vmem:[%s688_s1] sm:$0xff]  ;;  %v532_v1 = vmov 0   ;;  %v533_v2 = vmov 2   ;;  %v534_v3 = vmov 1   ;;  %v535_v4 = vmov 3   ;;  %s187_s8 = scalar_select %p186_p12, %s518_s16, 1 }
  0x17   : > { %430 = vset.pattern.permute.xlu0 %v532_v1  ;;  %432 = vset.pattern.permute.xlu1 %v533_v2  ;;  %v195_v5 = vld [vmem:[%s689_s2] sm:$0xff]  ;;  %s189_s9 = scalar_select %p188_p13, %s514_s15, 1  ;;  %v202_v6 = vlaneseq }
  0x18   : > { %199 = vperm.xlu0 %430, %v194_v0   ;;  %218 = vperm.xlu1 %432, %v194_v0   ;;  %s348_s10 = sshll.u32 %s187_s8, 1  ;;  %s264_s8 = sshll.u32 %s185_s7, 4  ;;  %s265_s8 = int_to_ptr.vmem [resolvable:$true] %s264_s8 }
  0x19   : > { %s191_s11 = sadd.s32 %s348_s10, %s189_s9  ;;  %v203_v7 = vshrl.u32 %v202_v6, 7  ;;  %s438_s21 = scalar_lea.vmem %s265_s8, 128 }
  0x1a   : > { %s349_s20 = sshll.u32 %s191_s11, 2  ;;  %s262_s11 = scalar_lea.hbm %s690_s3, %s352_s6 }
  0x1b   : > { %s193_s27 = scalar_lea.vmem %s687_s0, %s349_s20  ;;  %v204_v8 = vsub.s32 0, %v203_v7  ;;  %v213_v9 = vsub.s32 1, %v203_v7  ;;  %v223_v12 = vsub.s32 2, %v203_v7  ;;  %v233_v14 = vsub.s32 3, %v203_v7  ;;  %s249_s20 = scalar_lea.sflag [#allocation3], %s183_s28 }
  0x1c   : > { %431 = vset.pattern.permute.xlu0 %v534_v3  ;;  %433 = vset.pattern.permute.xlu1 %v535_v4  ;;  %v196_v10 = vld [vmem:[%s193_s27] sm:$0xf]  ;;  %p439_p0 = scmp.ne.s32.totalorder %s265_s8, %s438_s21  ;;  %s536_s16 = smov [#allocation2]  }
  0x1d   : > { %208 = vperm.xlu0 %431, %v194_v0   ;;  %228 = vperm.xlu1 %433, %v194_v0   ;;  %v205_v15 = vrot.slane %v196_v10, %v204_v8  ;;  %v214_v16 = vrot.slane %v196_v10, %v213_v9  ;;  %v224_v17 = vrot.slane %v196_v10, %v223_v12  ;;  %s442_s15 = sshll.u32 %s536_s16, 4  ;;  %s443_s15 = int_to_ptr.vmem [resolvable:$false] %s442_s15 }
  0x1e   : > { %v234_v18 = vrot.slane %v196_v10, %v233_v14  ;;  %p440_p1 = pnand %p439_p0, %p608_p3  ;;  %s444_s24 = scalar_lea.vmem %s443_s15, 256 }
  0x1f   : > { %p445_p4 = scmp.lt.s32.totalorder %s265_s8, %s443_s15  ;;  %p446_p5 = scmp.lt.s32.totalorder %s444_s24, %s438_s21 }
  0x20   : > { %p441_p2 = pneg %p440_p1 }
  0x21   : > { %434 = vset.pattern.permute.xlu1 %v532_v1  ;;  %435 = vset.pattern.permute.xlu0 %v532_v1  ;;  %p447_p6 = por %p446_p5, %p445_p4 }
  0x22   : > { %239 = vperm.xlu1 %434, %v195_v5  }
  0x23   : > { %p448_p7 = pnand %p447_p6, %p441_p2 }
  0x93   : > { %v200_v11 = vpop.permute.xlu0 %199  ;;  %v219_v13 = vpop.permute.xlu1 %218 }
  0x94   : > { %v206_v21 = vmul.f32 %v205_v15, %v200_v11  ;;  %v225_v23 = vmul.f32 %v224_v17, %v219_v13 }
  0x98   : > { %v209_v19 = vpop.permute.xlu0 %208  ;;  %v229_v20 = vpop.permute.xlu1 %228 }
  0x99   : > { %v215_v22 = vmul.f32 %v214_v16, %v209_v19  ;;  %v235_v25 = vmul.f32 %v234_v18, %v229_v20 }
  0x9b   : > { %v216_v24 = vadd.f32 %v215_v22, %v206_v21 }
  0x9d   : > { %v226_v26 = vadd.f32 %v225_v23, %v216_v24  ;;  %v240_v27 = vpop.permute.xlu1 %239 }
  0x9f   : > { %v236_v28 = vadd.f32 %v235_v25, %v226_v26 }
  0xa1   : > { %v242_v29 = vadd.f32 %v240_v27, %v236_v28 }
  0xa3   : > { %v243_v30 = vmul.f32 0.5, %v242_v29 }
  0xa5   : > { %436 = vtanh.f32 %v243_v30 }
  0xb2   : > { %v437_v31 = vpop.eup %436 }
  0xb3   : > { %v245_v32 = vmul.f32 0.5, %v437_v31 }
  0xb5   : > { %v246_v33 = vadd.f32 0.5, %v245_v32 }
  0xb7   : > { %247 = vst [vmem:[%s185_s7] sm:$0xff] %v246_v33 }
  0xb8   : > { %451 = shalt.err (!%p448_p7)
}
  0xb9   : > { %s452_s27 = scalar_lea.hbm %s262_s11, 128  ;;  %s456_s4 = scalar_lea.hbm %s690_s3, 512 }
  0xba   : > { %p453_p9 = scmp.ne.s32.totalorder %s262_s11, %s452_s27  ;;  %p457_p12 = scmp.lt.s32.totalorder %s262_s11, %s690_s3 }
  0xbb   : > { %p458_p13 = scmp.lt.s32.totalorder %s456_s4, %s452_s27 }
  0xbc   : > { %p454_p10 = pnand %p453_p9, %p608_p3 }
  0xbd   : > { %p459_p0 = por %p458_p13, %p457_p12 }
  0xbe   : > { %p455_p11 = pneg %p454_p10 }
  0xc0   : > { %p460_p1 = pnand %p459_p0, %p455_p11 }
  0xc2   : > { %463 = shalt.err (!%p460_p1)
}
  0xc3   : > { %355 = dma.vmem_to_hbm [thread:$0]  (%p608_p3), %s265_s8, 128, %s262_s11, %s249_s20  }
  0xc4 PF: > { %p361_p2 = scmp.ge.s32.totalorder %s530_s19, 2  ;;  %s276_s7 = sand.u32 1, %s502_s12  }
  0xc5   : > { %s277_s9 = scalar_lea.sflag [#allocation3], %s276_s7 }
  0xc6   : > { %p358_p4 = pnand %p361_p2, %p617_p8 }
  0xc8   : > { %p359_p5 = pneg %p358_p4 }
  0xca   : > { %497 = dma.done.wait (%p359_p5), %s277_s9, 128  }
  0xcb   : > { %499 = vsyncadd (%p359_p5), %s277_s9, 4294967168  ;;  %s16_s19 = sadd.s32 1, %s530_s19   ;;  %s693_s12 = smov %s506_s13 }
  0xcc   : > { %p13_p6 = scmp.ge.s32.totalorder %s16_s19, 6   ;;  %s694_s13 = smov %s510_s14 }
  0xcd   : > { %s695_s14 = smov %s626_s30  ;;  %s696_s15 = smov %s522_s17 }
  0xce   : > { %s697_s16 = smov %s526_s18  ;;  %s698_s17 = smov %s701_s22 }
  0xcf   : > { %s699_s18 = smov %s705_s23  ;;  %15 = sbr.rel (!%p13_p6) target bundleno = 5 (0x5), region = 67 }
  0xd4   :  { %282 = vsyncpa [#allocation3], 1 }
  0xd5   :  { %284 = vsyncpa [#allocation3 + $0x1], 1 }

</bundles_post_ra>
